<compile_context>
chip_gen: v6e
topology: v6e:2x2x1
jax: 0.10.0
libtpu: 0.0.40
codegen_flags: <defaults>
</compile_context>

<pallas_src>
import functools

import jax
import jax.numpy as jnp
from jax.experimental import pallas as pl
from jax.experimental.pallas import tpu as pltpu


def _round_up(n, m):
    return ((n + m - 1) // m) * m


def _select_tb(B, tb_max):
    """Batch-tile rows: multiple of 8; >=2 grid steps for v7x when B allows."""
    if B >= 16:
        tb = _round_up(pl.cdiv(B, 2), 8)   # guarantee at least 2 grid steps
    else:
        tb = _round_up(B, 8)
    return max(8, min(tb_max, tb))


def _matmul_logsoftmax_kernel(x_ref, w_ref, o_ref):
    # x_ref: (TB, 784)  flattened input rows for this batch tile
    # w_ref: (784, 10)  folded conv weight (constant block across the grid)
    # o_ref: (TB, 10)   log-softmax output (f32)
    y = jnp.dot(x_ref[...], w_ref[...], preferred_element_type=jnp.float32)
    # numerically-stable log-softmax over the class axis
    m = jnp.max(y, axis=-1, keepdims=True)
    s = y - m
    lse = jnp.log(jnp.sum(jnp.exp(s), axis=-1, keepdims=True))
    o_ref[...] = (s - lse).astype(o_ref.dtype)


def fold_weights(w0, w1, dtype=jnp.float32):
    """Fold the two conv weights into a single (784, 10) matmul weight."""
    w0_mat = w0.reshape(57, 784).astype(jnp.float32)   # OIHW -> (57, 784)
    w1_mat = w1.reshape(10, 57).astype(jnp.float32)    # (10, 57)
    # x @ W0^T @ W1^T == x @ (W1 @ W0)^T
    return (w1_mat @ w0_mat).T.astype(dtype)            # (784, 10)


def _forward_folded(x, w_fold, *, tb_max=2048):
    """x: (B, 1, 28, 28) or (B, 784); w_fold: (784, 10). Returns (B, 10) f32."""
    B = x.shape[0]
    x_flat = x.reshape(B, 784)
    if not jnp.issubdtype(x_flat.dtype, jnp.floating):
        x_flat = x_flat.astype(jnp.float32)
    # tiny weight: match the (possibly bf16) activation dtype, no extra pass
    w_fold = w_fold.astype(x_flat.dtype)

    tb = _select_tb(B, tb_max)
    grid = (pl.cdiv(B, tb),)          # edge block: padded reads, masked writes
    itemsize = jnp.dtype(x_flat.dtype).itemsize

    cost = pl.CostEstimate(
        flops=2 * B * 784 * 10 + 4 * B * 10,
        transcendentals=2 * B * 10,            # exp + log
        bytes_accessed=itemsize * (B * 784 + 784 * 10) + 4 * B * 10,
    )

    return pl.pallas_call(
        _matmul_logsoftmax_kernel,
        out_shape=jax.ShapeDtypeStruct((B, 10), jnp.float32),
        grid=grid,
        in_specs=[
            pl.BlockSpec((tb, 784), lambda i: (i, 0)),   # pipelined over batch
            pl.BlockSpec((784, 10), lambda i: (0, 0)),   # weight stays resident
        ],
        out_specs=pl.BlockSpec((tb, 10), lambda i: (i, 0)),
        compiler_params=pltpu.CompilerParams(
            dimension_semantics=("parallel",),
            vmem_limit_bytes=48 << 20,
        ),
        cost_estimate=cost,
    )(x_flat, w_fold)


def make_conv2dsigmoid_2(w0, w1, *, tb_max=2048):
    """Hoist the weight fold out of the per-call path (weights static)."""
    w_fold = fold_weights(w0, w1)

    @jax.jit
    def forward(x):
        return _forward_folded(x, w_fold, tb_max=tb_max)

    return forward


def conv2dsigmoid_2_forward(x, w0, w1, *, tb_max=2048):
    """One-shot convenience wrapper (folds weights per call)."""
    return _forward_folded(x, fold_weights(w0, w1), tb_max=tb_max)


def _reference(x, w0, w1):
    # un-fused reference: exactly the original module's math
    B = x.shape[0]
    x_flat = x.reshape(B, 784).astype(jnp.float32)
    h = x_flat @ w0.reshape(57, 784).T
    y = h @ w1.reshape(10, 57).T
    return jax.nn.log_softmax(y, axis=1)


if __name__ == "__main__":
    key = jax.random.PRNGKey(0)
    kx, k0, k1, kx2 = jax.random.split(key, 4)

    fan0 = 1 * 28 * 28
    w0 = jax.random.uniform(k0, (57, 1, 28, 28), jnp.float32,
                            -1.0 / jnp.sqrt(fan0), 1.0 / jnp.sqrt(fan0))
    fan1 = 57 * 1 * 1
    w1 = jax.random.uniform(k1, (10, 57, 1, 1), jnp.float32,
                            -1.0 / jnp.sqrt(fan1), 1.0 / jnp.sqrt(fan1))

    forward = make_conv2dsigmoid_2(w0, w1)

    # case 1: tiny batch (single edge block)
    B = 2
    x = jax.random.normal(kx, (B, 1, 28, 28), dtype=jnp.float32)
    out = jax.block_until_ready(forward(x))
    ref = _reference(x, w0, w1)
    assert out.shape == (B, 10)
    # weight folding changes FP association order; tolerance slightly relaxed
    assert jnp.allclose(out, ref, atol=1e-4, rtol=1e-4), "mismatch (B=2)"

    # case 2: non-divisible batch, >=2 grid steps (edge-block masked writes)
    B2 = 20
    x2 = jax.random.normal(kx2, (B2, 1, 28, 28), dtype=jnp.float32)
    out2 = jax.block_until_ready(forward(x2))
    ref2 = _reference(x2, w0, w1)
    assert out2.shape == (B2, 10)
    assert jnp.allclose(out2, ref2, atol=1e-4, rtol=1e-4), "mismatch (B=20)"

    print("KERNEL_OK")
</pallas_src>

<mosaic_0001>
module attributes {stable_mosaic.version = 11 : i64} {
  func.func @_matmul_logsoftmax_kernel(%arg0: i32, %arg1: memref<8x784xf32, #tpu.memory_space<vmem>>, %arg2: memref<784x10xf32, #tpu.memory_space<vmem>>, %arg3: memref<8x10xf32, #tpu.memory_space<vmem>>) attributes {dimension_semantics = [#tpu.dimension_semantics<parallel>], iteration_bounds = array<i64: 1>, scalar_prefetch = 0 : i64, scratch_operands = 0 : i64, tpu.core_type = #tpu.core_type<tc>, window_params = [{transform_indices = @transform_0, window_bounds = array<i64: 8, 784>}, {pipeline_mode = #tpu.pipeline_mode<synchronous>, transform_indices = @transform_1, window_bounds = array<i64: 784, 10>}, {transform_indices = @transform_2, window_bounds = array<i64: 8, 10>}]} {
    %c0 = arith.constant 0 : index
    %c0_0 = arith.constant 0 : index
    %0 = vector.load %arg1[%c0, %c0_0] : memref<8x784xf32, #tpu.memory_space<vmem>>, vector<8x784xf32>
    %c0_1 = arith.constant 0 : index
    %c0_2 = arith.constant 0 : index
    %1 = vector.load %arg2[%c0_1, %c0_2] : memref<784x10xf32, #tpu.memory_space<vmem>>, vector<784x10xf32>
    %cst = arith.constant dense<0.000000e+00> : vector<8x10xf32>
    %2 = tpu.matmul %0, %1, %cst {dimension_numbers = #tpu.dot_dimension_numbers<[1], [0], [0], [1], [0, 0, 1, 1], [], []>} : vector<8x784xf32>, vector<784x10xf32>, vector<8x10xf32> -> vector<8x10xf32>
    %cst_3 = arith.constant dense<0xFF800000> : vector<8xf32>
    %3 = vector.multi_reduction <maximumf>, %2, %cst_3 [1] : vector<8x10xf32> to vector<8xf32>
    %4 = vector.shape_cast %3 : vector<8xf32> to vector<8x1xf32>
    %5 = vector.broadcast %4 : vector<8x1xf32> to vector<8x10xf32>
    %6 = arith.subf %2, %5 : vector<8x10xf32>
    %7 = math.exp %6 : vector<8x10xf32>
    %cst_4 = arith.constant dense<0.000000e+00> : vector<8xf32>
    %8 = vector.multi_reduction <add>, %7, %cst_4 [1] : vector<8x10xf32> to vector<8xf32>
    %9 = vector.shape_cast %8 : vector<8xf32> to vector<8x1xf32>
    %10 = math.log %9 : vector<8x1xf32>
    %11 = vector.broadcast %10 : vector<8x1xf32> to vector<8x10xf32>
    %12 = arith.subf %6, %11 : vector<8x10xf32>
    %c0_5 = arith.constant 0 : index
    %c0_6 = arith.constant 0 : index
    %13 = vector.load %arg3[%c0_5, %c0_6] : memref<8x10xf32, #tpu.memory_space<vmem>>, vector<8x10xf32>
    tpu.vector_store %arg3[%c0_5, %c0_6], %12 {strides = array<i32>} : memref<8x10xf32, #tpu.memory_space<vmem>>, vector<8x10xf32>,
    return
  }
  func.func @transform_0(%arg0: i32) -> (i32, i32) {
    %c0_i32 = arith.constant 0 : i32
    %c0_i32_0 = arith.constant 0 : i32
    return %arg0, %c0_i32 : i32, i32
  }
  func.func @transform_1(%arg0: i32) -> (i32, i32) {
    %c0_i32 = arith.constant 0 : i32
    %c0_i32_0 = arith.constant 0 : i32
    %c0_i32_1 = arith.constant 0 : i32
    return %c0_i32, %c0_i32_0 : i32, i32
  }
  func.func @transform_2(%arg0: i32) -> (i32, i32) {
    %c0_i32 = arith.constant 0 : i32
    %c0_i32_0 = arith.constant 0 : i32
    return %arg0, %c0_i32 : i32, i32
  }
}

</mosaic_0001>

<bundles_post_ra>
// kernel: forward.1
= control target key start
LH: loop header
LB: loop body
LE: loop exit
PB: predicated region body
PF: predicated region fallthrough
CT: control target
= control target key end

     0   :  { %7 = vsyncpa [#allocation3], 0  ;;  %s787_s0 = inlined_call_operand.vmem [shape: f32[2,784], index: 0, kind: input, shape index: {}]   ;;  %s788_s1 = inlined_call_operand.hbm [shape: f32[784,10], index: 1, kind: input, shape index: {}]   ;;  %s789_s2 = inlined_call_operand.hbm [shape: f32[2,10], index: 2, kind: output, shape index: {}]  }
   0x1   :  { %8 = vsyncpa [#allocation4], 0  ;;  %s716_s9 = smov [#allocation2]  }
   0x2   :  { %s16_s10 = sshll.u32 %s716_s9, 4  ;;  %s17_s10 = int_to_ptr.vmem [resolvable:$true] %s16_s10 }
   0x3   :  { %s680_s11 = scalar_lea.vmem %s17_s10, 12544  ;;  %p685_p1 = scmp.lt.s32.totalorder %s17_s10, %s17_s10 }
   0x4   :  { %p681_p0 = scmp.ne.s32.totalorder %s17_s10, %s680_s11  ;;  %p686_p2 = scmp.lt.s32.totalorder %s680_s11, %s680_s11 }
   0x6   :  { %p687_p3 = por %p686_p2, %p685_p1 }
   0x8   :  { %p688_p4 = pnand %p687_p3, %p681_p0 }
   0xa   :  { %691 = shalt.err (!%p688_p4)
}
   0xb   :  { %s717_s12 = smov 128   ;;  %s718_s13 = smov 8  }
   0xc   :  { %22 = dma.hbm_to_vmem [thread:$0]  %s788_s1, 12544, %s17_s10, [#allocation3], %s717_s12, %s717_s12, %s718_s13  }
   0xd   :  { %712 = dma.done.wait [#allocation3], 12544  }
   0xe   :  { %713 = vsyncadd [#allocation3], 4294954752  ;;  %v65_v0 = vld [vmem:[#allocation2 + $0xf8] sm:$0xff]  ;;  %v64_v4 = vld [vmem:[#allocation2 + $0xf0] sm:$0xff]  ;;  %v719_v30 = vmov 1983009808   ;;  %v147_v32 = vlaneseq }
   0xf   :  { %v97_v1 = vld [vmem:[#allocation2 + $0x1f8] sm:$0xff]  ;;  %532 = vmatprep.subr.mxu0 %v65_v0  ;;  %v96_v5 = vld [vmem:[#allocation2 + $0x1f0] sm:$0xff]  ;;  %v63_v8 = vld [vmem:[#allocation2 + $0xe8] sm:$0xff]  ;;  %v145_v31 = vunpack.c.l.s4 %v719_v30  ;;  %vm721_vm0 = vmmov 0   ;;  %vm217_vm1 = vcmask 130048   ;;  %vm500_vm2 = vcmask 80896  }
  0x10   :  { %v49_v2 = vld [vmem:[#allocation2 + $0x78] sm:$0xff]  ;;  %567 = vmatprep.subr.mxu1 %v97_v1  ;;  %v48_v6 = vld [vmem:[#allocation2 + $0x70] sm:$0xff]  ;;  %v95_v9 = vld [vmem:[#allocation2 + $0x1e8] sm:$0xff]  ;;  %v148_v42 = vshrl.u32 %v147_v32, 7 }
  0x11   :  { %v81_v3 = vld [vmem:[#allocation2 + $0x178] sm:$0xff]  ;;  %533 = vmatpush3.msra.mxu0 %v49_v2  ;;  %v80_v7 = vld [vmem:[#allocation2 + $0x170] sm:$0xff]  ;;  %v47_v10 = vld [vmem:[#allocation2 + $0x68] sm:$0xff]  ;;  %v146_v41 = vunpack.c.0.s8 %v145_v31 }
  0x12   :  { %568 = vmatpush3.msra.mxu1 %v81_v3  ;;  %534 = vmatprep.subr.mxu0 %v64_v4  ;;  %v79_v11 = vld [vmem:[#allocation2 + $0x168] sm:$0xff]  ;;  %v62_v12 = vld [vmem:[#allocation2 + $0xe0] sm:$0xff]  ;;  %v61_v16 = vld [vmem:[#allocation2 + $0xd8] sm:$0xff] }
  0x13   :  { %569 = vmatprep.subr.mxu1 %v96_v5  ;;  %535 = vmatpush3.msra.mxu0 %v48_v6  ;;  %v94_v13 = vld [vmem:[#allocation2 + $0x1e0] sm:$0xff]  ;;  %v93_v17 = vld [vmem:[#allocation2 + $0x1d8] sm:$0xff]  ;;  %v60_v20 = vld [vmem:[#allocation2 + $0xd0] sm:$0xff]  ;;  %v743_v55 = vsub.s32 %v146_v41, %v148_v42 }
  0x14   :  { %570 = vmatpush3.msra.mxu1 %v80_v7  ;;  %536 = vmatprep.subr.mxu0 %v63_v8  ;;  %v46_v14 = vld [vmem:[#allocation2 + $0x60] sm:$0xff]  ;;  %v45_v18 = vld [vmem:[#allocation2 + $0x58] sm:$0xff]  ;;  %v92_v21 = vld [vmem:[#allocation2 + $0x1d0] sm:$0xff] }
  0x15   :  { %571 = vmatprep.subr.mxu1 %v95_v9  ;;  %v78_v15 = vld [vmem:[#allocation2 + $0x160] sm:$0xff]  ;;  %537 = vmatpush3.msra.mxu0 %v47_v10  ;;  %v77_v19 = vld [vmem:[#allocation2 + $0x158] sm:$0xff]  ;;  %v44_v22 = vld [vmem:[#allocation2 + $0x50] sm:$0xff] }
  0x16   :  { %572 = vmatpush3.msra.mxu1 %v79_v11  ;;  %538 = vmatprep.subr.mxu0 %v62_v12  ;;  %v76_v23 = vld [vmem:[#allocation2 + $0x150] sm:$0xff]  ;;  %v59_v24 = vld [vmem:[#allocation2 + $0xc8] sm:$0xff]  ;;  %v58_v28 = vld [vmem:[#allocation2 + $0xc0] sm:$0xff] }
  0x17   :  { %573 = vmatprep.subr.mxu1 %v94_v13  ;;  %539 = vmatpush3.msra.mxu0 %v46_v14  ;;  %v91_v25 = vld [vmem:[#allocation2 + $0x1c8] sm:$0xff]  ;;  %v90_v29 = vld [vmem:[#allocation2 + $0x1c0] sm:$0xff]  ;;  %v57_v35 = vld [vmem:[#allocation2 + $0xb8] sm:$0xff] }
  0x18   :  { %574 = vmatpush3.msra.mxu1 %v78_v15  ;;  %540 = vmatprep.subr.mxu0 %v61_v16  ;;  %v43_v26 = vld [vmem:[#allocation2 + $0x48] sm:$0xff]  ;;  %v42_v33 = vld [vmem:[#allocation2 + $0x40] sm:$0xff]  ;;  %v89_v36 = vld [vmem:[#allocation2 + $0x1b8] sm:$0xff] }
  0x19   :  { %575 = vmatprep.subr.mxu1 %v93_v17  ;;  %541 = vmatpush3.msra.mxu0 %v45_v18  ;;  %v75_v27 = vld [vmem:[#allocation2 + $0x148] sm:$0xff]  ;;  %v74_v34 = vld [vmem:[#allocation2 + $0x140] sm:$0xff]  ;;  %v41_v37 = vld [vmem:[#allocation2 + $0x38] sm:$0xff] }
  0x1a   :  { %576 = vmatpush3.msra.mxu1 %v77_v19  ;;  %542 = vmatprep.subr.mxu0 %v60_v20  ;;  %v73_v38 = vld [vmem:[#allocation2 + $0x138] sm:$0xff]  ;;  %v56_v39 = vld [vmem:[#allocation2 + $0xb0] sm:$0xff]  ;;  %v55_v45 = vld [vmem:[#allocation2 + $0xa8] sm:$0xff] }
  0x1b   :  { %577 = vmatprep.subr.mxu1 %v92_v21  ;;  %543 = vmatpush3.msra.mxu0 %v44_v22  ;;  %v88_v40 = vld [vmem:[#allocation2 + $0x1b0] sm:$0xff]  ;;  %v87_v46 = vld [vmem:[#allocation2 + $0x1a8] sm:$0xff]  ;;  %v54_v49 = vld [vmem:[#allocation2 + $0xa0] sm:$0xff] }
  0x1c   :  { %578 = vmatpush3.msra.mxu1 %v76_v23  ;;  %544 = vmatprep.subr.mxu0 %v59_v24  ;;  %v40_v43 = vld [vmem:[#allocation2 + $0x30] sm:$0xff]  ;;  %v39_v47 = vld [vmem:[#allocation2 + $0x28] sm:$0xff]  ;;  %v86_v50 = vld [vmem:[#allocation2 + $0x1a0] sm:$0xff]  ;;  %v720_v24 = vmov 0.0  }
  0x1d   :  { %579 = vmatprep.subr.mxu1 %v91_v25  ;;  %545 = vmatpush3.msra.mxu0 %v43_v26  ;;  %v72_v44 = vld [vmem:[#allocation2 + $0x130] sm:$0xff]  ;;  %v71_v48 = vld [vmem:[#allocation2 + $0x128] sm:$0xff]  ;;  %v38_v51 = vld [vmem:[#allocation2 + $0x20] sm:$0xff] }
  0x1e   :  { %580 = vmatpush3.msra.mxu1 %v75_v27  ;;  %546 = vmatprep.subr.mxu0 %v58_v28  ;;  %v70_v52 = vld [vmem:[#allocation2 + $0x120] sm:$0xff]  ;;  %v53_v53 = vld [vmem:[#allocation2 + $0x98] sm:$0xff]  ;;  %v52_v62 = vld [vmem:[#allocation2 + $0x90] sm:$0xff] }
  0x1f   :  { %581 = vmatprep.subr.mxu1 %v90_v29  ;;  %547 = vmatpush3.msra.mxu0 %v42_v33  ;;  %v85_v54 = vld [vmem:[#allocation2 + $0x198] sm:$0xff]  ;;  %v656_v57 = vld [vmem:[%s787_s0] ss:$14 sps:$4 sm:$0xff]   ;;  %v660_v60 = vld [vmem:[%s787_s0 + $0x4] ss:$14 sps:$4 sm:$0xff]  }
  0x20   :  { %582 = vmatpush3.msra.mxu1 %v74_v34  ;;  %548 = vmatprep.subr.mxu0 %v57_v35  ;;  %v37_v56 = vld [vmem:[#allocation2 + $0x18] sm:$0xff]  ;;  %v661_v61 = vld [vmem:[%s787_s0 + $0x20] ss:$14 sps:$4 sm:$0xff]   ;;  %v150_v0 = vrot.slane %v656_v57, %v743_v55  ;;  %v157_v4 = vrot.slane %v660_v60, %v743_v55  ;;  %v665_v28 = vld [vmem:[%s787_s0 + $0x24] ss:$14 sps:$4 sm:$0xff]  }
  0x21   :  { %583 = vmatprep.subr.mxu1 %v89_v36  ;;  %549 = vmatpush3.msra.mxu0 %v41_v37  ;;  %v658_v58 = vld [vmem:[%s787_s0 + $0x1c] ss:$14 sps:$4 sm:$0xff]   ;;  %v84_v63 = vld [vmem:[#allocation2 + $0x190] sm:$0xff]  ;;  %v171_v5 = vrot.slane %v661_v61, %v743_v55  ;;  %v50_v10 = vld [vmem:[#allocation2 + $0x80] sm:$0xff]  ;;  %v200_v35 = vrot.slane %v665_v28, %v743_v55 }
  0x22   :  { %584 = vmatpush3.msra.mxu1 %v73_v38  ;;  %550 = vmatprep.subr.mxu0 %v56_v39  ;;  %v69_v59 = vld [vmem:[#allocation2 + $0x118] sm:$0xff]  ;;  %v164_v1 = vrot.slane %v658_v58, %v743_v55  ;;  %v36_v2 = vld [vmem:[#allocation2 + $0x10] sm:$0xff]  ;;  %v51_v6 = vld [vmem:[#allocation2 + $0x88] sm:$0xff] }
  0x23   :  { %585 = vmatprep.subr.mxu1 %v88_v40  ;;  %551 = vmatpush3.msra.mxu0 %v40_v43  ;;  %v68_v3 = vld [vmem:[#allocation2 + $0x110] sm:$0xff]  ;;  %v83_v7 = vld [vmem:[#allocation2 + $0x188] sm:$0xff]  ;;  %v82_v11 = vld [vmem:[#allocation2 + $0x180] sm:$0xff]  ;;  %v175_v14 = vcombine.high %v157_v4, %v171_v5  ;;  %v174_v17 = vcombine.low %v157_v4, %v171_v5 }
  0x24   :  { %586 = vmatpush3.msra.mxu1 %v72_v44  ;;  %552 = vmatprep.subr.mxu0 %v55_v45  ;;  %v35_v8 = vld [vmem:[#allocation2 + $0x8] sm:$0xff]  ;;  %v173_v12 = vcombine.high %v150_v0, %v164_v1  ;;  %v34_v13 = vld [vmem:[#allocation2] sm:$0xff]  ;;  %v172_v16 = vcombine.low %v150_v0, %v164_v1  ;;  %v129_v18 = vld [vmem:[#allocation2 + $0x2f8] sm:$0xff] }
  0x25   :  { %587 = vmatprep.subr.mxu1 %v87_v46  ;;  %553 = vmatpush3.msra.mxu0 %v39_v47  ;;  %v67_v9 = vld [vmem:[#allocation2 + $0x108] sm:$0xff]  ;;  %v66_v15 = vld [vmem:[#allocation2 + $0x100] sm:$0xff]  ;;  %v113_v19 = vld [vmem:[#allocation2 + $0x278] sm:$0xff] }
  0x26   :  { %588 = vmatpush3.msra.mxu1 %v71_v48  ;;  %554 = vmatprep.subr.mxu0 %v54_v49  ;;  %v128_v20 = vld [vmem:[#allocation2 + $0x2f0] sm:$0xff]  ;;  %v127_v22 = vld [vmem:[#allocation2 + $0x2e8] sm:$0xff]  ;;  %v130_v30 = vld [vmem:[#allocation2 + $0x300] sm:$0xff] }
  0x27   :  { %589 = vmatprep.subr.mxu1 %v86_v50  ;;  %555 = vmatpush3.msra.mxu0 %v38_v51  ;;  %v112_v21 = vld [vmem:[#allocation2 + $0x270] sm:$0xff]  ;;  %v111_v23 = vld [vmem:[#allocation2 + $0x268] sm:$0xff]  ;;  %v126_v31 = vld [vmem:[#allocation2 + $0x2e0] sm:$0xff] }
  0x28   :  { %590 = vmatpush3.msra.mxu1 %v70_v52  ;;  %556 = vmatprep.subr.mxu0 %v53_v53  ;;  %v662_v25 = vld [vmem:[%s787_s0 + $0x8] ss:$14 sps:$4 sm:$0xff]   ;;  %v664_v26 = vld [vmem:[%s787_s0 + $0xc] ss:$14 sps:$4 sm:$0x33]   ;;  %v110_v34 = vld [vmem:[#allocation2 + $0x260] sm:$0xff] }
  0x29   :  { %591 = vmatprep.subr.mxu1 %v85_v54  ;;  %557 = vmatpush3.msra.mxu0 %v37_v56  ;;  %v131_v27 = vld [vmem:[#allocation2 + $0x308] sm:$0xff]  ;;  %v774_v32 = vrot.slane %v662_v25, %v743_v55  ;;  %v193_v33 = vrot.slane %v664_v26, %v743_v55  ;;  %v125_v37 = vld [vmem:[#allocation2 + $0x2d8] sm:$0xff]  ;;  %v124_v41 = vld [vmem:[#allocation2 + $0x2d0] sm:$0xff] }
  0x2a   :  { %592 = vmatpush3.msra.mxu1 %v69_v59  ;;  %558 = vmatprep.subr.mxu0 %v52_v62  ;;  %v667_v29 = vld [vmem:[%s787_s0 + $0x28] ss:$14 sps:$4 sm:$0x33]   ;;  %v109_v38 = vld [vmem:[#allocation2 + $0x258] sm:$0xff]  ;;  %v122_v45 = vld [vmem:[#allocation2 + $0x2c0] sm:$0xff] }
  0x2b   :  { %593 = vmatprep.subr.mxu1 %v84_v63  ;;  %559 = vmatpush3.msra.mxu0 %v36_v2  ;;  %v207_v36 = vrot.slane %v667_v29, %v743_v55  ;;  %v209_v39 = vcombine.high %v774_v32, %v200_v35  ;;  %v108_v42 = vld [vmem:[#allocation2 + $0x250] sm:$0xff]  ;;  %v123_v43 = vld [vmem:[#allocation2 + $0x2c8] sm:$0xff]  ;;  %v106_v46 = vld [vmem:[#allocation2 + $0x240] sm:$0xff]  ;;  %v208_v63 = vcombine.low %v774_v32, %v200_v35 }
  0x2c   :  { %594 = vmatpush3.msra.mxu1 %v68_v3  ;;  %560 = vmatprep.subr.mxu0 %v51_v6  ;;  %v107_v44 = vld [vmem:[#allocation2 + $0x248] sm:$0xff]  ;;  %v121_v47 = vld [vmem:[#allocation2 + $0x2b8] sm:$0xff]  ;;  %v120_v49 = vld [vmem:[#allocation2 + $0x2b0] sm:$0xff] }
  0x2d   :  { %595 = vmatprep.subr.mxu1 %v83_v7  ;;  %561 = vmatpush3.msra.mxu0 %v35_v8  ;;  %v210_v40 = vcombine.low %v193_v33, %v207_v36  ;;  %v105_v48 = vld [vmem:[#allocation2 + $0x238] sm:$0xff]  ;;  %v104_v50 = vld [vmem:[#allocation2 + $0x230] sm:$0xff]  ;;  %v119_v51 = vld [vmem:[#allocation2 + $0x2a8] sm:$0xff] }
  0x2e   :  { %596 = vmatpush3.msra.mxu1 %v67_v9  ;;  %562 = vmatprep.subr.mxu0 %v50_v10  ;;  %v103_v52 = vld [vmem:[#allocation2 + $0x228] sm:$0xff]  ;;  %v118_v53 = vld [vmem:[#allocation2 + $0x2a0] sm:$0xff]  ;;  %v117_v55 = vld [vmem:[#allocation2 + $0x298] sm:$0xff] }
  0x2f   :  { %597 = vmatprep.subr.mxu1 %v82_v11  ;;  %563 = vmatpush3.msra.mxu0 %v34_v13  ;;  %v102_v54 = vld [vmem:[#allocation2 + $0x220] sm:$0xff]  ;;  %v101_v56 = vld [vmem:[#allocation2 + $0x218] sm:$0xff]  ;;  %v116_v57 = vld [vmem:[#allocation2 + $0x290] sm:$0xff] }
  0x30   :  { %284 = vmatprep.mubr.f32.mxu0 %v173_v12  ;;  %598 = vmatpush3.msra.mxu1 %v66_v15  ;;  %v100_v58 = vld [vmem:[#allocation2 + $0x210] sm:$0xff]  ;;  %v115_v59 = vld [vmem:[#allocation2 + $0x288] sm:$0xff]  ;;  %v114_v61 = vld [vmem:[#allocation2 + $0x280] sm:$0xff] }
  0x31   :  { %354 = vmatprep.mubr.f32.mxu1 %v175_v14  ;;  %285 = vmatmul.mubr.f32.vlgmr.msra.gmra.mxu0 %v172_v16  ;;  %v99_v60 = vld [vmem:[#allocation2 + $0x208] sm:$0xff]  ;;  %v98_v62 = vld [vmem:[#allocation2 + $0x200] sm:$0xff] }
  0x32   :  { %355 = vmatmul.mubr.f32.vlgmr.msra.gmra.mxu1 %v174_v17  ;;  %602 = vmatprep.subr.mxu0 %v129_v18 }
  0x33   :  { %640 = vmatprep.subr.mxu1 %v720_v24  ;;  %603 = vmatpush3.msra.mxu0 %v113_v19 }
  0x34   :  { %644 = vmatprep.mubr.msk.f32.mxu1 %vm721_vm0, %v720_v24  ;;  %604 = vmatprep.subr.mxu0 %v128_v20 }
  0x35   :  { %641 = vmatpush3.msra.mxu1 %v131_v27  ;;  %605 = vmatpush3.msra.mxu0 %v112_v21 }
  0x36   :  { %642 = vmatprep.subr.mxu1 %v720_v24  ;;  %606 = vmatprep.subr.mxu0 %v127_v22 }
  0x37   :  { %643 = vmatpush3.msra.mxu1 %v130_v30  ;;  %607 = vmatpush3.msra.mxu0 %v111_v23 }
  0x38   :  { %608 = vmatprep.subr.mxu0 %v126_v31  ;;  %424 = vmatprep.mubr.f32.mxu0 %v209_v39 }
  0x39   :  { %609 = vmatpush3.msra.mxu0 %v110_v34  ;;  %645 = vmatmul.mubr.msk.f32.vlgmr.msra.gmra.mxu1 %vm217_vm1, %v210_v40 }
  0x3a   :  { %610 = vmatprep.subr.mxu0 %v125_v37 }
  0x3b   :  { %611 = vmatpush3.msra.mxu0 %v109_v38 }
  0x3c   :  { %612 = vmatprep.subr.mxu0 %v124_v41 }
  0x3d   :  { %613 = vmatpush3.msra.mxu0 %v108_v42 }
  0x3e   :  { %614 = vmatprep.subr.mxu0 %v123_v43 }
  0x3f   :  { %615 = vmatpush3.msra.mxu0 %v107_v44 }
  0x40   :  { %616 = vmatprep.subr.mxu0 %v122_v45 }
  0x41   :  { %617 = vmatpush3.msra.mxu0 %v106_v46 }
  0x42   :  { %618 = vmatprep.subr.mxu0 %v121_v47 }
  0x43   :  { %619 = vmatpush3.msra.mxu0 %v105_v48 }
  0x44   :  { %620 = vmatprep.subr.mxu0 %v120_v49 }
  0x45   :  { %621 = vmatpush3.msra.mxu0 %v104_v50 }
  0x46   :  { %622 = vmatprep.subr.mxu0 %v119_v51 }
  0x47   :  { %623 = vmatpush3.msra.mxu0 %v103_v52 }
  0x48   :  { %624 = vmatprep.subr.mxu0 %v118_v53 }
  0x49   :  { %625 = vmatpush3.msra.mxu0 %v102_v54 }
  0x4a   :  { %626 = vmatprep.subr.mxu0 %v117_v55 }
  0x4b   :  { %627 = vmatpush3.msra.mxu0 %v101_v56 }
  0x4c   :  { %628 = vmatprep.subr.mxu0 %v116_v57 }
  0x4d   :  { %629 = vmatpush3.msra.mxu0 %v100_v58 }
  0x4e   :  { %630 = vmatprep.subr.mxu0 %v115_v59 }
  0x4f   :  { %631 = vmatpush3.msra.mxu0 %v99_v60 }
  0x50   :  { %632 = vmatprep.subr.mxu0 %v114_v61 }
  0x51   :  { %633 = vmatpush3.msra.mxu0 %v98_v62 }
  0x52   :  { %425 = vmatmul.mubr.f32.vlgmr.msra.gmra.mxu0 %v208_v63 }
  0xf1   :  { %v564_v4 = vpop.f32.mrf.mxu0 }
  0xf2   :  { %v599_v0 = vpop.f32.mrf.mxu1 }
  0xf3   :  { %v565_v5 = vpop.f32.mrf.mxu0 }
  0xf4   :  { %v600_v1 = vpop.f32.mrf.mxu1  ;;  %v566_v6 = vadd.f32 %v565_v5, %v564_v4 }
  0xf5   :  { %v601_v7 = vadd.f32 %v600_v1, %v599_v0 }
  0xf7   :  { %v357_v10 = vadd.f32 %v601_v7, %v566_v6 }
  0xf9   :  { %v496_v2 = vpop.f32.mrf.mxu1 }
  0xfb   :  { %v646_v3 = vpop.f32.mrf.mxu1 }
 0x112   :  { %v634_v8 = vpop.f32.mrf.mxu0 }
 0x114   :  { %v635_v9 = vpop.f32.mrf.mxu0 }
 0x115   :  { %v636_v11 = vadd.f32 %v635_v9, %v634_v8 }
 0x117   :  { %v427_v12 = vadd.f32 %v636_v11, %v357_v10 }
 0x119   :  { %v497_v13 = vadd.f32 %v496_v2, %v427_v12 }
 0x11b   :  { %v501_v14 = vsel %vm500_vm2, %v497_v13, -inf }
 0x11c   :  { %502 = vmax.xlane.f32.xlu0 %v501_v14 }
 0x1a5   :  { %v503_v15 = vpop.xlane.xlu0 %502 }
 0x1a6   :  { %v504_v16 = vsub.f32 %v497_v13, %v503_v15 }
 0x1a8   :  { %v505_v17 = vmul.f32 1.442695, %v504_v16 }
 0x1aa   :  { %668 = vpow2.f32 %v505_v17 }
 0x1b7   :  { %v669_v18 = vpop.eup %668 }
 0x1b8   :  { %v507_v19 = vsel %vm500_vm2, %v669_v18, 0.0 }
 0x1b9   :  { %508 = vadd.xlane.f32.xlu0 %v507_v19 }
 0x242   :  { %v509_v20 = vpop.xlane.xlu0 %508 }
 0x243   :  { %670 = vlog2.f32 %v509_v20 }
 0x250   :  { %v671_v21 = vpop.eup %670 }
 0x251   :  { %v511_v22 = vmul.f32 0.6931472, %v671_v21 }
 0x253   :  { %v512_v23 = vsub.f32 %v504_v16, %v511_v22 }
 0x255   :  { %513 = vst.msk [vmem:[#allocation5] sm:$0xff] %vm500_vm2, %v512_v23 }
 0x256   :  { %518 = vsyncadd [#allocation4], 96  ;;  %s722_s0 = smov [#allocation5]  }
 0x257   :  { %s519_s3 = sshll.u32 %s722_s0, 4  ;;  %s520_s3 = int_to_ptr.vmem [resolvable:$true] %s519_s3 }
 0x258   :  { %s692_s4 = scalar_lea.vmem %s520_s3, 32  ;;  %s696_s5 = scalar_lea.vmem %s520_s3, 128 }
 0x259   :  { %p693_p5 = scmp.ne.s32.totalorder %s520_s3, %s692_s4  ;;  %p697_p6 = scmp.lt.s32.totalorder %s520_s3, %s520_s3 }
 0x25a   :  { %p698_p7 = scmp.lt.s32.totalorder %s696_s5, %s692_s4 }
 0x25c   :  { %p699_p8 = por %p698_p7, %p697_p6 }
 0x25e   :  { %p700_p9 = pnand %p699_p8, %p693_p5 }
 0x260   :  { %703 = shalt.err (!%p700_p9)
}
 0x261   :  { %s723_s6 = smov 32   ;;  %s724_s7 = smov 2  }
 0x262   :  { %525 = dma.vmem_to_hbm [thread:$0]  %s520_s3, 32, %s789_s2, [#allocation4], %s723_s6, %s723_s6, %s724_s7  }
 0x263   :  { %714 = dma.done.wait [#allocation4], 128  }
 0x264   :  { %715 = vsyncadd [#allocation4], 4294967168 }
 0x265   :  { %529 = vsyncpa [#allocation3], 1 }
 0x266   :  { %530 = vsyncpa [#allocation4], 1 }

</bundles_post_ra>
